<compile_context>
chip_gen: v7x
topology: tpu7x:2x2x1
jax: 0.10.0
libtpu: 0.0.40
codegen_flags: <defaults>
</compile_context>

<pallas_src>
import jax
import jax.numpy as jnp
from jax.experimental import pallas as pl
from jax.experimental.pallas import tpu as pltpu


def _wlp_kernel(w_ref, x_ref, o_ref):
    """w_ref: SMEM (L,) pre-normalized f32 weights (scalar prefetch).
    x_ref:  VMEM (L, TB, E) input block (all layers of this batch tile).
    o_ref:  VMEM (TB, E) output block, written exactly once."""
    num_layers = x_ref.shape[0]
    acc = w_ref[0] * x_ref[0].astype(jnp.float32)
    for l in range(1, num_layers):      # L is tiny (4-12): static unroll on the VPU
        acc = acc + w_ref[l] * x_ref[l].astype(jnp.float32)
    o_ref[...] = acc.astype(o_ref.dtype)


def _choose_batch_tile(num_layers, batch, emb, in_bytes, out_bytes,
                       budget_bytes=8 * 1024 * 1024):
    """Pick the batch-row tile TB for native (L, B, E) tiling.

    TB is a multiple of the sublane count (or equals B for tiny batches), sized so
    that double-buffered input + f32 accumulator + double-buffered output fit the
    per-step VMEM budget, and capped so the grid has >= 2 steps when possible.
    """
    sub = {1: 32, 2: 16}.get(in_bytes, 8)      # sublane multiple for 2nd-minor dim
    if batch <= sub:
        return batch                            # single full-extent block over B

    # VMEM held per grid step, per batch row (all terms, not just the input block).
    per_row = 2 * num_layers * emb * in_bytes + emb * 4 + 2 * emb * out_bytes
    tb_budget = max(sub, (budget_bytes // max(per_row, 1)) // sub * sub)
    tb_aligned = (batch // sub) * sub           # largest aligned tile <= B (>= sub)
    tb = min(tb_budget, tb_aligned)

    # Prefer >= 2 grid steps (megacore sharding on v7x) without dropping below sub.
    while pl.cdiv(batch, tb) < 2 and tb > sub:
        tb = max(sub, (tb // 2) // sub * sub)
    return tb


def weighted_layer_pooling(pooled_encoder_states, layer_weights):
    """pooled_encoder_states: (L, B, E); layer_weights: (L,). Returns (B, E)."""
    L, B, E = pooled_encoder_states.shape
    dtype = pooled_encoder_states.dtype
    in_bytes = jnp.dtype(dtype).itemsize
    out_bytes = in_bytes

    # Pre-normalize: removes the final (B, E)-wide divide and the wsum SMEM operand.
    # (sum(w) == 0 yields inf/nan exactly like the PyTorch reference.)
    w = layer_weights.astype(jnp.float32)
    w_norm = w / jnp.sum(w)

    tb = _choose_batch_tile(L, B, E, in_bytes, out_bytes)
    grid = (pl.cdiv(B, tb),)

    grid_spec = pltpu.PrefetchScalarGridSpec(
        num_scalar_prefetch=1,
        grid=grid,
        in_specs=[
            # Whole layer axis inside the block; native layout, tile over batch rows.
            pl.BlockSpec((L, tb, E), lambda i, w_s: (0, i, 0)),
        ],
        out_specs=pl.BlockSpec((tb, E), lambda i, w_s: (i, 0)),
    )

    out = pl.pallas_call(
        _wlp_kernel,
        out_shape=jax.ShapeDtypeStruct((B, E), dtype),
        grid_spec=grid_spec,
        compiler_params=pltpu.CompilerParams(
            dimension_semantics=("parallel",),        # no reduction axis on the grid
            vmem_limit_bytes=48 * 1024 * 1024,        # fits v7x (64 MiB), covers v5e default
        ),
    )(w_norm, pooled_encoder_states)

    return out


def weighted_layer_pooling_ref(pooled_encoder_states, layer_weights):
    """Pure-JAX reference matching the PyTorch forward exactly."""
    w = layer_weights[:, None, None]
    return (w * pooled_encoder_states).sum(axis=0) / layer_weights.sum()


if __name__ == "__main__":
    key = jax.random.PRNGKey(0)
    k1, k2, k3 = jax.random.split(key, 3)

    # Case 1: module-style tiny demo shape; layer_weights = ones(L) as in __init__.
    L, B, E = 4, 2, 32
    layer_weights = jnp.ones((L,), dtype=jnp.float32)
    x_small = jax.random.normal(k1, (L, B, E), dtype=jnp.float32)
    out = jax.block_until_ready(weighted_layer_pooling(x_small, layer_weights))
    ref = weighted_layer_pooling_ref(x_small, layer_weights)
    assert out.shape == (B, E)
    assert jnp.allclose(out, ref, atol=1e-5, rtol=1e-5), "mismatch vs reference (case 1)"

    # Case 2: lane-dense embedding (E % 128 == 0) with non-uniform weights; exercises
    # multi-step batch tiling (B=16 -> TB=8 -> 2 grid steps) and pre-normalization.
    L2, B2, E2 = 4, 16, 256
    w2 = jnp.arange(1.0, L2 + 1.0, dtype=jnp.float32)
    x2 = jax.random.normal(k2, (L2, B2, E2), dtype=jnp.float32)
    out2 = jax.block_until_ready(weighted_layer_pooling(x2, w2))
    ref2 = weighted_layer_pooling_ref(x2, w2)
    assert out2.shape == (B2, E2)
    assert jnp.allclose(out2, ref2, atol=1e-5, rtol=1e-5), "mismatch vs reference (case 2)"

    # Case 3: batch not a multiple of the sublane count (B=20 -> cdiv grid, partial
    # last block) to exercise the ragged-tail path.
    L3, B3, E3 = 4, 20, 128
    w3 = jnp.array([0.5, 1.0, 2.0, 4.0], dtype=jnp.float32)
    x3 = jax.random.normal(k3, (L3, B3, E3), dtype=jnp.float32)
    out3 = jax.block_until_ready(weighted_layer_pooling(x3, w3))
    ref3 = weighted_layer_pooling_ref(x3, w3)
    assert out3.shape == (B3, E3)
    assert jnp.allclose(out3, ref3, atol=1e-5, rtol=1e-5), "mismatch vs reference (case 3)"

    print("KERNEL_OK")
</pallas_src>

<mosaic_0001>
module attributes {stable_mosaic.version = 11 : i64} {
  func.func @_wlp_kernel(%arg0: i32, %arg1: memref<4xf32, #tpu.memory_space<smem>>, %arg2: memref<4x2x32xf32, #tpu.memory_space<vmem>>, %arg3: memref<2x32xf32, #tpu.memory_space<vmem>>) attributes {dimension_semantics = [#tpu.dimension_semantics<parallel>], iteration_bounds = array<i64: 1>, scalar_prefetch = 1 : i64, scratch_operands = 0 : i64, tpu.core_type = #tpu.core_type<tc>, window_params = [{transform_indices = @transform_0, window_bounds = array<i64: 4, 2, 32>}, {transform_indices = @transform_1, window_bounds = array<i64: 2, 32>}]} {
    %c0 = arith.constant 0 : index
    %0 = memref.load %arg1[%c0] : memref<4xf32, #tpu.memory_space<smem>>
    %c0_0 = arith.constant 0 : index
    %c0_1 = arith.constant 0 : index
    %c0_2 = arith.constant 0 : index
    %1 = vector.load %arg2[%c0_0, %c0_1, %c0_2] : memref<4x2x32xf32, #tpu.memory_space<vmem>>, vector<1x2x32xf32>
    %2 = vector.shape_cast %1 : vector<1x2x32xf32> to vector<2x32xf32>
    %3 = vector.broadcast %0 : f32 to vector<2x32xf32>
    %4 = arith.mulf %3, %2 : vector<2x32xf32>
    %c1 = arith.constant 1 : index
    %5 = memref.load %arg1[%c1] : memref<4xf32, #tpu.memory_space<smem>>
    %c1_3 = arith.constant 1 : index
    %c0_4 = arith.constant 0 : index
    %c0_5 = arith.constant 0 : index
    %6 = vector.load %arg2[%c1_3, %c0_4, %c0_5] : memref<4x2x32xf32, #tpu.memory_space<vmem>>, vector<1x2x32xf32>
    %7 = vector.shape_cast %6 : vector<1x2x32xf32> to vector<2x32xf32>
    %8 = vector.broadcast %5 : f32 to vector<2x32xf32>
    %9 = arith.mulf %8, %7 : vector<2x32xf32>
    %10 = arith.addf %4, %9 : vector<2x32xf32>
    %c2 = arith.constant 2 : index
    %11 = memref.load %arg1[%c2] : memref<4xf32, #tpu.memory_space<smem>>
    %c2_6 = arith.constant 2 : index
    %c0_7 = arith.constant 0 : index
    %c0_8 = arith.constant 0 : index
    %12 = vector.load %arg2[%c2_6, %c0_7, %c0_8] : memref<4x2x32xf32, #tpu.memory_space<vmem>>, vector<1x2x32xf32>
    %13 = vector.shape_cast %12 : vector<1x2x32xf32> to vector<2x32xf32>
    %14 = vector.broadcast %11 : f32 to vector<2x32xf32>
    %15 = arith.mulf %14, %13 : vector<2x32xf32>
    %16 = arith.addf %10, %15 : vector<2x32xf32>
    %c3 = arith.constant 3 : index
    %17 = memref.load %arg1[%c3] : memref<4xf32, #tpu.memory_space<smem>>
    %c3_9 = arith.constant 3 : index
    %c0_10 = arith.constant 0 : index
    %c0_11 = arith.constant 0 : index
    %18 = vector.load %arg2[%c3_9, %c0_10, %c0_11] : memref<4x2x32xf32, #tpu.memory_space<vmem>>, vector<1x2x32xf32>
    %19 = vector.shape_cast %18 : vector<1x2x32xf32> to vector<2x32xf32>
    %20 = vector.broadcast %17 : f32 to vector<2x32xf32>
    %21 = arith.mulf %20, %19 : vector<2x32xf32>
    %22 = arith.addf %16, %21 : vector<2x32xf32>
    %c0_12 = arith.constant 0 : index
    %c0_13 = arith.constant 0 : index
    %23 = vector.load %arg3[%c0_12, %c0_13] : memref<2x32xf32, #tpu.memory_space<vmem>>, vector<2x32xf32>
    tpu.vector_store %arg3[%c0_12, %c0_13], %22 {strides = array<i32>} : memref<2x32xf32, #tpu.memory_space<vmem>>, vector<2x32xf32>,
    return
  }
  func.func @transform_0(%arg0: i32, %arg1: memref<4xf32, #tpu.memory_space<smem>>) -> (i32, i32, i32) {
    %c0_i32 = arith.constant 0 : i32
    %c0_i32_0 = arith.constant 0 : i32
    %c0_i32_1 = arith.constant 0 : i32
    return %c0_i32, %arg0, %c0_i32_0 : i32, i32, i32
  }
  func.func @transform_1(%arg0: i32, %arg1: memref<4xf32, #tpu.memory_space<smem>>) -> (i32, i32) {
    %c0_i32 = arith.constant 0 : i32
    %c0_i32_0 = arith.constant 0 : i32
    return %arg0, %c0_i32 : i32, i32
  }
}

</mosaic_0001>

<bundles_post_ra>
// kernel: tpu_custom_call.1
= control target key start
LH: loop header
LB: loop body
LE: loop exit
PB: predicated region body
PF: predicated region fallthrough
CT: control target
= control target key end

     0   :  { %s191_s0 = inlined_call_operand.hbm [shape: f32[4], index: 0, kind: input, shape index: {}]   ;;  %s192_s1 = inlined_call_operand.hbm [shape: f32[4,2,32], index: 1, kind: input, shape index: {}]   ;;  %s193_s2 = inlined_call_operand.hbm [shape: f32[2,32], index: 2, kind: output, shape index: {}]  }
   0x1   :  { %s75_s11 = scalar_lea.hbm %s191_s0, 16 }
   0x2   :  { %p76_p0 = scmp.ne.s32.totalorder %s191_s0, %s75_s11  ;;  %p79_p1 = scmp.lt.u32.totalorder %s75_s11, %s191_s0 }
   0x4   :  { %p81_p2 = pnand %p79_p1, %p76_p0 }
   0x6   :  { %84 = shalt.err (!%p81_p2)  }
   0x7   :  { %s135_s16 = smov [#allocation3]  }
   0x8   :  { %8 = dma.hbm_to_smem %s191_s0, 16, %s135_s16, [#allocation2] }
   0x9   :  { %129 = dma.done.wait [#allocation2], 16 }
   0xa   :  { %130 = vsyncadd [#allocation2], 4294967280 }
   0xb   :  { %10 = sfence }
   0xc   :  { %11 = vsyncpa [#allocation5], 0 }
   0xd   :  { %12 = vsyncpa [#allocation6], 0  ;;  %s136_s19 = smov [#allocation4]   ;;  %s85_s23 = scalar_lea.hbm %s192_s1, 128 }
   0xe   :  { %s18_s20 = sshll.u32 %s136_s19, 4  ;;  %p86_p3 = scmp.ne.s32.totalorder %s192_s1, %s85_s23  ;;  %s19_s20 = int_to_ptr.vmem [resolvable:$true] %s18_s20 }
   0xf   :  { %p89_p4 = scmp.lt.u32.totalorder %s85_s23, %s192_s1 }
  0x11   :  { %p91_p5 = pnand %p89_p4, %p86_p3 }
  0x13   :  { %94 = shalt.err (!%p91_p5)
}
  0x14   :  { %s95_s0 = scalar_lea.vmem %s19_s20, 128  ;;  %p100_p7 = scmp.lt.s32.totalorder %s19_s20, %s19_s20 }
  0x15   :  { %p96_p6 = scmp.ne.s32.totalorder %s19_s20, %s95_s0  ;;  %p101_p8 = scmp.lt.s32.totalorder %s95_s0, %s95_s0 }
  0x17   :  { %p102_p9 = por %p101_p8, %p100_p7 }
  0x19   :  { %p103_p10 = pnand %p102_p9, %p96_p6 }
  0x1b   :  { %106 = shalt.err (!%p103_p10)
}
  0x1c   :  { %s137_s28 = smov 32   ;;  %s138_s29 = smov 2  }
  0x1d   :  { %24 = dma.hbm_to_vmem [thread:$0]  %s192_s1, 128, %s19_s20, [#allocation5], %s137_s28, %s137_s28, %s138_s29  }
  0x1e   :  { %131 = dma.done.wait [#allocation5], 128  }
  0x1f   :  { %132 = vsyncadd [#allocation5], 4294967168  ;;  %s28_s4 = sld [smem:[#allocation3]]  ;;  %s67_s5 = sld [smem:[#allocation3 + $0x1]]  ;;  %v29_v0 = vld [vmem:[#allocation4] sm:$0x3] }
  0x20   :  { %s68_s6 = sld [smem:[#allocation3 + $0x2]]  ;;  %s69_s7 = sld [smem:[#allocation3 + $0x3]]  ;;  %v34_v2 = vld [vmem:[#allocation4 + $0x2] sm:$0x3]  ;;  %v40_v4 = vld [vmem:[#allocation4 + $0x4] sm:$0x3] }
  0x21   :  { %v46_v8 = vld [vmem:[#allocation4 + $0x6] sm:$0x3]  ;;  %s139_s1 = smov [#allocation7]   ;;  %vm50_vm0 = vcmask 254976  }
  0x22   :  { %s58_s8 = sshll.u32 %s139_s1, 4  ;;  %s59_s8 = int_to_ptr.vmem [resolvable:$true] %s58_s8 }
  0x23   :  { %s107_s9 = scalar_lea.vmem %s59_s8, 32  ;;  %p112_p12 = scmp.lt.s32.totalorder %s59_s8, %s59_s8 }
  0x24   :  { %p108_p11 = scmp.ne.s32.totalorder %s59_s8, %s107_s9  ;;  %p113_p13 = scmp.lt.s32.totalorder %s107_s9, %s107_s9 }
  0x25   :  { %v30_v1 = vstv %s28_s4  ;;  %v35_v3 = vstv %s67_s5 }
  0x26   :  { %v31_v5 = vmul.f32 %v30_v1, %v29_v0  ;;  %v36_v6 = vmul.f32 %v35_v3, %v34_v2  ;;  %v41_v7 = vstv %s68_s6  ;;  %v47_v9 = vstv %s69_s7  ;;  %p114_p0 = por %p113_p13, %p112_p12 }
  0x27   :  { %v42_v10 = vmul.f32 %v41_v7, %v40_v4  ;;  %v48_v12 = vmul.f32 %v47_v9, %v46_v8 }
  0x28   :  { %v37_v11 = vadd.f32 %v36_v6, %v31_v5  ;;  %p115_p1 = pnand %p114_p0, %p108_p11 }
  0x2a   :  { %v43_v13 = vadd.f32 %v42_v10, %v37_v11 }
  0x2c   :  { %v49_v14 = vadd.f32 %v48_v12, %v43_v13 }
  0x2e   :  { %51 = vst.msk [vmem:[#allocation7] sm:$0x3] %vm50_vm0, %v49_v14 }
  0x2f   :  { %118 = shalt.err (!%p115_p1)
}
  0x30   :  { %s119_s12 = scalar_lea.hbm %s193_s2, 32 }
  0x31   :  { %p120_p2 = scmp.ne.s32.totalorder %s193_s2, %s119_s12  ;;  %p123_p3 = scmp.lt.u32.totalorder %s119_s12, %s193_s2 }
  0x33   :  { %p125_p4 = pnand %p123_p3, %p120_p2 }
  0x35   :  { %128 = shalt.err (!%p125_p4)
}
  0x36   :  { %61 = dma.vmem_to_hbm [thread:$0]  %s59_s8, 32, %s193_s2, [#allocation6]  }
  0x37   :  { %133 = dma.done.wait [#allocation6], 32  }
  0x38   :  { %134 = vsyncadd [#allocation6], 4294967264 }
  0x39   :  { %65 = vsyncpa [#allocation5], 1 }
  0x3a   :  { %66 = vsyncpa [#allocation6], 1 }

</bundles_post_ra>
